<compile_context>
chip_gen: v6e
topology: v6e:2x2x1
jax: 0.10.0
libtpu: 0.0.40
codegen_flags: <defaults>
</compile_context>

<pallas_src>
import jax
import jax.numpy as jnp
from jax.experimental import pallas as pl
from jax.experimental.pallas import tpu as pltpu


def _round_up(n, m):
    return ((n + m - 1) // m) * m


def _make_policy_kernel(a_size):
    def kernel(x_ref, w1t_ref, b1t_ref, w2t_ref, b2t_ref, out_ref):
        # fc1 + ReLU in (features, batch) layout.  x arrives untransposed as
        # (tB, S); contract over the state dim (last axis of both operands),
        # i.e. w1t @ x^T, handled natively by the MXU as an rhs-transposed
        # matmul -- no wrapper-side transpose of x needed.
        h = jax.lax.dot_general(
            w1t_ref[...], x_ref[...],
            dimension_numbers=(((1,), (1,)), ((), ())),
            preferred_element_type=jnp.float32)                 # (Hp, tB)
        h = jnp.maximum(h + b1t_ref[...], 0.0)

        # fc2: (A, Hp) @ (Hp, tB) -> (A, tB)
        logits = jnp.dot(w2t_ref[...], h,
                         preferred_element_type=jnp.float32) + b2t_ref[...]

        if a_size == 2:
            # 2-way softmax == sigmoid of the logit difference; expressed via
            # tanh: a single EUP op, no overflow, no cross-lane reductions.
            d = logits[0:1, :] - logits[1:2, :]                 # (1, tB)
            p0 = 0.5 * (jnp.tanh(0.5 * d) + 1.0)                # sigmoid(d)
            out_ref[...] = jnp.concatenate([p0, 1.0 - p0], axis=0)
        else:
            # General, numerically stable softmax over the action (sublane)
            # axis, with exact division so probabilities sum to 1.
            m = jnp.max(logits, axis=0, keepdims=True)
            e = jnp.exp(logits - m)
            out_ref[...] = e / jnp.sum(e, axis=0, keepdims=True)
    return kernel


def prepare_params(w1, b1, w2, b2):
    """One-time transform of the nn.Linear parameters into the kernel's
    resident (transposed, sublane-padded) layout.  Call once, reuse across
    every forward step -- this keeps pad/transpose ops out of the hot path."""
    S, H = w1.shape
    A = w2.shape[1]
    Hp = _round_up(H, 8)                  # sublane granule only, no 128-pad
    f32 = jnp.float32
    # Exact zero-padding: padded hidden units are ReLU(0)=0 and have zero
    # outgoing fc2 weights, so logits are unchanged.
    w1t = jnp.zeros((Hp, S), f32).at[:H, :].set(w1.T.astype(f32))
    b1t = jnp.zeros((Hp, 1), f32).at[:H, :].set(b1.astype(f32).reshape(H, 1))
    w2t = jnp.zeros((A, Hp), f32).at[:, :H].set(w2.T.astype(f32))
    b2t = b2.astype(f32).reshape(A, 1)
    return w1t, b1t, w2t, b2t


def cartpole_policy_forward_t(x, params_t, *, num_batch_tiles=1):
    """x: (B, s_size) observations; params_t from prepare_params().
    Returns probs in lane-dense (a_size, B) layout with no wrapper-side
    transposes.  num_batch_tiles=1 on single-TensorCore chips (v5e/v6e);
    use 2 on v7x so each TensorCore gets one 'parallel' batch tile."""
    w1t, b1t, w2t, b2t = params_t
    B, S = x.shape
    Hp = w1t.shape[0]
    A = w2t.shape[0]
    assert w1t.shape[1] == S

    # Each batch tile must be a full multiple of 128 lanes (unmasked stores).
    Bp = _round_up(B, 128 * num_batch_tiles)
    x = x.astype(jnp.float32)
    if Bp != B:
        # Rare path (only when B isn't already lane-aligned).
        x = jnp.zeros((Bp, S), jnp.float32).at[:B, :].set(x)
    block_b = Bp // num_batch_tiles

    out = pl.pallas_call(
        _make_policy_kernel(A),
        out_shape=jax.ShapeDtypeStruct((A, Bp), jnp.float32),
        grid=(num_batch_tiles,),
        in_specs=[
            pl.BlockSpec((block_b, S), lambda i: (i, 0)),  # new batch tile/step
            pl.BlockSpec((Hp, S), lambda i: (0, 0)),       # weights & biases
            pl.BlockSpec((Hp, 1), lambda i: (0, 0)),       # stay resident in
            pl.BlockSpec((A, Hp), lambda i: (0, 0)),       # VMEM across the
            pl.BlockSpec((A, 1), lambda i: (0, 0)),        # batch grid axis
        ],
        out_specs=pl.BlockSpec((A, block_b), lambda i: (0, i)),
        compiler_params=pltpu.CompilerParams(
            dimension_semantics=("parallel",)),
    )(x, w1t, b1t, w2t, b2t)

    return out[:, :B] if Bp != B else out


def cartpole_policy_forward(x, params_t, **kwargs):
    """PyTorch-convention forward: returns probs of shape (B, a_size).
    Downstream code that can consume the (a_size, B) layout should call
    cartpole_policy_forward_t directly and skip this transpose."""
    return cartpole_policy_forward_t(x, params_t, **kwargs).T


def init_params(key, s_size, h_size, a_size):
    # Deterministic init mimicking nn.Linear's uniform(-1/sqrt(fan_in), 1/sqrt(fan_in)).
    k1, k2, k3, k4 = jax.random.split(key, 4)
    lim1 = 1.0 / jnp.sqrt(s_size)
    lim2 = 1.0 / jnp.sqrt(h_size)
    w1 = jax.random.uniform(k1, (s_size, h_size), jnp.float32, -lim1, lim1)
    b1 = jax.random.uniform(k2, (1, h_size), jnp.float32, -lim1, lim1)
    w2 = jax.random.uniform(k3, (h_size, a_size), jnp.float32, -lim2, lim2)
    b2 = jax.random.uniform(k4, (1, a_size), jnp.float32, -lim2, lim2)
    return w1, b1, w2, b2


if __name__ == "__main__":
    # CartPole: s_size=4, a_size=2; a lane-aligned batch of environments per
    # call amortizes launch/step overhead (single grid step by default).
    s_size, h_size, a_size, batch = 4, 32, 2, 256
    key = jax.random.PRNGKey(0)
    kx, kp = jax.random.split(key)
    x = jax.random.normal(kx, (batch, s_size), jnp.float32)
    w1, b1, w2, b2 = init_params(kp, s_size, h_size, a_size)

    # One-time parameter preparation (outside the per-step hot path).
    params_t = prepare_params(w1, b1, w2, b2)

    probs = cartpole_policy_forward(x, params_t)
    probs = jax.block_until_ready(probs)

    # Sanity check against a plain-JAX reference.
    h_ref = jnp.maximum(x @ w1 + b1, 0.0)
    ref = jax.nn.softmax(h_ref @ w2 + b2, axis=1)
    assert probs.shape == (batch, a_size)
    assert jnp.allclose(probs, ref, atol=1e-4, rtol=0.0)
    assert jnp.allclose(jnp.sum(probs, axis=1), 1.0, atol=1e-5)

    # TODO(synk): Categorical sampling / log_prob from act() is host-side RL
    # plumbing; it could be fused into this kernel (pltpu.prng uniform vs p0)
    # to save a dispatch, but it is not part of the module's forward pass.
    print("KERNEL_OK")
</pallas_src>

<mosaic_0001>
module attributes {stable_mosaic.version = 11 : i64} {
  func.func @kernel(%arg0: i32, %arg1: memref<256x4xf32, #tpu.memory_space<vmem>>, %arg2: memref<32x4xf32, #tpu.memory_space<vmem>>, %arg3: memref<32x1xf32, #tpu.memory_space<vmem>>, %arg4: memref<2x32xf32, #tpu.memory_space<vmem>>, %arg5: memref<2x1xf32, #tpu.memory_space<vmem>>, %arg6: memref<2x256xf32, #tpu.memory_space<vmem>>) attributes {dimension_semantics = [#tpu.dimension_semantics<parallel>], iteration_bounds = array<i64: 1>, scalar_prefetch = 0 : i64, scratch_operands = 0 : i64, tpu.core_type = #tpu.core_type<tc>, window_params = [{transform_indices = @transform_0, window_bounds = array<i64: 256, 4>}, {pipeline_mode = #tpu.pipeline_mode<synchronous>, transform_indices = @transform_1, window_bounds = array<i64: 32, 4>}, {pipeline_mode = #tpu.pipeline_mode<synchronous>, transform_indices = @transform_2, window_bounds = array<i64: 32, 1>}, {pipeline_mode = #tpu.pipeline_mode<synchronous>, transform_indices = @transform_3, window_bounds = array<i64: 2, 32>}, {pipeline_mode = #tpu.pipeline_mode<synchronous>, transform_indices = @transform_4, window_bounds = array<i64: 2, 1>}, {transform_indices = @transform_5, window_bounds = array<i64: 2, 256>}]} {
    %c0 = arith.constant 0 : index
    %c0_0 = arith.constant 0 : index
    %0 = vector.load %arg2[%c0, %c0_0] : memref<32x4xf32, #tpu.memory_space<vmem>>, vector<32x4xf32>
    %c0_1 = arith.constant 0 : index
    %c0_2 = arith.constant 0 : index
    %1 = vector.load %arg1[%c0_1, %c0_2] : memref<256x4xf32, #tpu.memory_space<vmem>>, vector<256x4xf32>
    %cst = arith.constant dense<0.000000e+00> : vector<32x256xf32>
    %2 = tpu.matmul %0, %1, %cst {dimension_numbers = #tpu.dot_dimension_numbers<[1], [1], [0], [0], [0, 0, 1, 0], [], []>} : vector<32x4xf32>, vector<256x4xf32>, vector<32x256xf32> -> vector<32x256xf32>
    %c0_3 = arith.constant 0 : index
    %c0_4 = arith.constant 0 : index
    %3 = vector.load %arg3[%c0_3, %c0_4] : memref<32x1xf32, #tpu.memory_space<vmem>>, vector<32x1xf32>
    %4 = vector.broadcast %3 : vector<32x1xf32> to vector<32x256xf32>
    %5 = arith.addf %2, %4 : vector<32x256xf32>
    %cst_5 = arith.constant 0.000000e+00 : f32
    %6 = vector.broadcast %cst_5 : f32 to vector<32x256xf32>
    %7 = arith.maximumf %5, %6 : vector<32x256xf32>
    %c0_6 = arith.constant 0 : index
    %c0_7 = arith.constant 0 : index
    %8 = vector.load %arg4[%c0_6, %c0_7] : memref<2x32xf32, #tpu.memory_space<vmem>>, vector<2x32xf32>
    %cst_8 = arith.constant dense<0.000000e+00> : vector<2x256xf32>
    %9 = tpu.matmul %8, %7, %cst_8 {dimension_numbers = #tpu.dot_dimension_numbers<[1], [0], [0], [1], [0, 0, 1, 1], [], []>} : vector<2x32xf32>, vector<32x256xf32>, vector<2x256xf32> -> vector<2x256xf32>
    %c0_9 = arith.constant 0 : index
    %c0_10 = arith.constant 0 : index
    %10 = vector.load %arg5[%c0_9, %c0_10] : memref<2x1xf32, #tpu.memory_space<vmem>>, vector<2x1xf32>
    %11 = vector.broadcast %10 : vector<2x1xf32> to vector<2x256xf32>
    %12 = arith.addf %9, %11 : vector<2x256xf32>
    %13 = vector.extract_strided_slice %12 {offsets = [0, 0], sizes = [1, 256], strides = [1, 1]} : vector<2x256xf32> to vector<1x256xf32>
    %14 = vector.extract_strided_slice %12 {offsets = [1, 0], sizes = [1, 256], strides = [1, 1]} : vector<2x256xf32> to vector<1x256xf32>
    %15 = arith.subf %13, %14 : vector<1x256xf32>
    %cst_11 = arith.constant 5.000000e-01 : f32
    %16 = vector.broadcast %cst_11 : f32 to vector<1x256xf32>
    %17 = arith.mulf %16, %15 : vector<1x256xf32>
    %18 = math.tanh %17 : vector<1x256xf32>
    %cst_12 = arith.constant 1.000000e+00 : f32
    %19 = vector.broadcast %cst_12 : f32 to vector<1x256xf32>
    %20 = arith.addf %18, %19 : vector<1x256xf32>
    %cst_13 = arith.constant 5.000000e-01 : f32
    %21 = vector.broadcast %cst_13 : f32 to vector<1x256xf32>
    %22 = arith.mulf %21, %20 : vector<1x256xf32>
    %cst_14 = arith.constant 1.000000e+00 : f32
    %23 = vector.broadcast %cst_14 : f32 to vector<1x256xf32>
    %24 = arith.subf %23, %22 : vector<1x256xf32>
    %25 = tpu.concatenate %22, %24 in 0 : vector<1x256xf32>, vector<1x256xf32> -> vector<2x256xf32>
    %c0_15 = arith.constant 0 : index
    %c0_16 = arith.constant 0 : index
    %26 = vector.load %arg6[%c0_15, %c0_16] : memref<2x256xf32, #tpu.memory_space<vmem>>, vector<2x256xf32>
    tpu.vector_store %arg6[%c0_15, %c0_16], %25 {strides = array<i32>} : memref<2x256xf32, #tpu.memory_space<vmem>>, vector<2x256xf32>,
    return
  }
  func.func @transform_0(%arg0: i32) -> (i32, i32) {
    %c0_i32 = arith.constant 0 : i32
    %c0_i32_0 = arith.constant 0 : i32
    return %arg0, %c0_i32 : i32, i32
  }
  func.func @transform_1(%arg0: i32) -> (i32, i32) {
    %c0_i32 = arith.constant 0 : i32
    %c0_i32_0 = arith.constant 0 : i32
    %c0_i32_1 = arith.constant 0 : i32
    return %c0_i32, %c0_i32_0 : i32, i32
  }
  func.func @transform_2(%arg0: i32) -> (i32, i32) {
    %c0_i32 = arith.constant 0 : i32
    %c0_i32_0 = arith.constant 0 : i32
    %c0_i32_1 = arith.constant 0 : i32
    return %c0_i32, %c0_i32_0 : i32, i32
  }
  func.func @transform_3(%arg0: i32) -> (i32, i32) {
    %c0_i32 = arith.constant 0 : i32
    %c0_i32_0 = arith.constant 0 : i32
    %c0_i32_1 = arith.constant 0 : i32
    return %c0_i32, %c0_i32_0 : i32, i32
  }
  func.func @transform_4(%arg0: i32) -> (i32, i32) {
    %c0_i32 = arith.constant 0 : i32
    %c0_i32_0 = arith.constant 0 : i32
    %c0_i32_1 = arith.constant 0 : i32
    return %c0_i32, %c0_i32_0 : i32, i32
  }
  func.func @transform_5(%arg0: i32) -> (i32, i32) {
    %c0_i32 = arith.constant 0 : i32
    %c0_i32_0 = arith.constant 0 : i32
    return %c0_i32, %arg0 : i32, i32
  }
}

</mosaic_0001>

<bundles_post_ra>
// kernel: tpu_custom_call.1
= control target key start
LH: loop header
LB: loop body
LE: loop exit
PB: predicated region body
PF: predicated region fallthrough
CT: control target
= control target key end

     0   :  { %vm81_vm0 = vcmask 31744   ;;  %v531_v3 = vmov 0   ;;  %s737_s0 = inlined_call_operand.vmem [shape: f32[256,4], index: 0, kind: input, shape index: {}]   ;;  %s738_s1 = inlined_call_operand.vmem [shape: f32[32,4], index: 1, kind: input, shape index: {}]   ;;  %s739_s2 = inlined_call_operand.vmem [shape: f32[32,1], index: 2, kind: input, shape index: {}]   ;;  %s740_s3 = inlined_call_operand.vmem [shape: f32[2,32], index: 3, kind: input, shape index: {}]   ;;  %s741_s4 = inlined_call_operand.vmem [shape: f32[2,1], index: 4, kind: input, shape index: {}]   ;;  %s742_s5 = inlined_call_operand.hbm [shape: f32[2,256], index: 5, kind: output, shape index: {}]  }
   0x1   :  { %v56_v0 = vld [vmem:[%s737_s0 + $0xf8] sm:$0xff]  ;;  %v55_v2 = vld [vmem:[%s737_s0 + $0xf0] sm:$0xff]  ;;  %504 = vset.pattern.permute.xlu1 %v531_v3  ;;  %503 = vset.pattern.permute.xlu0 %v531_v3  ;;  %v54_v5 = vld [vmem:[%s737_s0 + $0xe8] sm:$0xff] }
   0x2   :  { %v40_v1 = vld [vmem:[%s737_s0 + $0x78] sm:$0xff]  ;;  %460 = vmatprep.subr.msk.mxu0 %vm81_vm0, %v56_v0  ;;  %v39_v4 = vld [vmem:[%s737_s0 + $0x70] sm:$0xff]  ;;  %v38_v6 = vld [vmem:[%s737_s0 + $0x68] sm:$0xff] }
   0x3   :  { %461 = vmatpush3.xpose.msk.msra.mxu0 %vm81_vm0, %v40_v1  ;;  %v53_v7 = vld [vmem:[%s737_s0 + $0xe0] sm:$0xff]  ;;  %v52_v10 = vld [vmem:[%s737_s0 + $0xd8] sm:$0xff]  ;;  %v58_v11 = vld [vmem:[%s739_s2 + $0x8] sm:$0xff] }
   0x4   :  { %462 = vmatprep.subr.msk.mxu0 %vm81_vm0, %v55_v2  ;;  %v594_v8 = vld [vmem:[%s738_s1] sm:$0xff]  ;;  %v60_v12 = vld [vmem:[%s739_s2 + $0x18] sm:$0xff]  ;;  %68 = vperm.xlu1 %504, %v58_v11  }
   0x5   :  { %v37_v9 = vld [vmem:[%s737_s0 + $0x60] sm:$0xff]  ;;  %492 = vmatprep.mubr.msk.f32.mxu0 %vm81_vm0, %v594_v8  ;;  %78 = vperm.xlu0 %503, %v60_v12  }
   0x7   :  { %463 = vmatpush3.xpose.msk.msra.mxu0 %vm81_vm0, %v39_v4 }
   0x8   :  { %464 = vmatprep.subr.msk.mxu0 %vm81_vm0, %v54_v5 }
   0xb   :  { %465 = vmatpush3.xpose.msk.msra.mxu0 %vm81_vm0, %v38_v6 }
   0xc   :  { %466 = vmatprep.subr.msk.mxu0 %vm81_vm0, %v53_v7 }
   0xd   :  { %10 = vsyncpa [#allocation3], 0  ;;  %v57_v13 = vld [vmem:[%s739_s2] sm:$0xff]  ;;  %v59_v14 = vld [vmem:[%s739_s2 + $0x10] sm:$0xff]  ;;  %v532_v42 = vmov 0.0   ;;  %vm294_vm1 = vcmask 261120  }
   0xe   :  { %v36_v15 = vld [vmem:[%s737_s0 + $0x58] sm:$0xff]  ;;  %v51_v16 = vld [vmem:[%s737_s0 + $0xd0] sm:$0xff]  ;;  %63 = vperm.xlu1 %504, %v57_v13   ;;  %73 = vperm.xlu0 %503, %v59_v14   ;;  %v288_v17 = vld [vmem:[%s741_s4] sm:$0x3]  ;;  %vm393_vm2 = vcmask 1040384  }
   0xf   :  { %467 = vmatpush3.xpose.msk.msra.mxu0 %vm81_vm0, %v37_v9  ;;  %v35_v18 = vld [vmem:[%s737_s0 + $0x50] sm:$0xff]  ;;  %v50_v19 = vld [vmem:[%s737_s0 + $0xc8] sm:$0xff]  ;;  %v49_v21 = vld [vmem:[%s737_s0 + $0xc0] sm:$0xff]  ;;  %362 = vmatprep.mubr.f32.mxu1 %v532_v42 }
  0x10   :  { %468 = vmatprep.subr.msk.mxu0 %vm81_vm0, %v52_v10  ;;  %v34_v20 = vld [vmem:[%s737_s0 + $0x48] sm:$0xff]  ;;  %v33_v22 = vld [vmem:[%s737_s0 + $0x40] sm:$0xff]  ;;  %v48_v23 = vld [vmem:[%s737_s0 + $0xb8] sm:$0xff] }
  0x11   :  { %v32_v24 = vld [vmem:[%s737_s0 + $0x38] sm:$0xff]  ;;  %v47_v25 = vld [vmem:[%s737_s0 + $0xb0] sm:$0xff]  ;;  %v46_v27 = vld [vmem:[%s737_s0 + $0xa8] sm:$0xff] }
  0x12   :  { %291 = vperm.xlu0 %503, %v288_v17   ;;  %v31_v26 = vld [vmem:[%s737_s0 + $0x30] sm:$0xff]  ;;  %v30_v28 = vld [vmem:[%s737_s0 + $0x28] sm:$0xff]  ;;  %v45_v29 = vld [vmem:[%s737_s0 + $0xa0] sm:$0xff] }
  0x13   :  { %469 = vmatpush3.xpose.msk.msra.mxu0 %vm81_vm0, %v36_v15  ;;  %v29_v30 = vld [vmem:[%s737_s0 + $0x20] sm:$0xff]  ;;  %v44_v31 = vld [vmem:[%s737_s0 + $0x98] sm:$0xff]  ;;  %v43_v33 = vld [vmem:[%s737_s0 + $0x90] sm:$0xff] }
  0x14   :  { %470 = vmatprep.subr.msk.mxu0 %vm81_vm0, %v51_v16  ;;  %v28_v32 = vld [vmem:[%s737_s0 + $0x18] sm:$0xff]  ;;  %v27_v34 = vld [vmem:[%s737_s0 + $0x10] sm:$0xff]  ;;  %v42_v35 = vld [vmem:[%s737_s0 + $0x88] sm:$0xff] }
  0x15   :  { %v26_v36 = vld [vmem:[%s737_s0 + $0x8] sm:$0xff]  ;;  %v41_v37 = vld [vmem:[%s737_s0 + $0x80] sm:$0xff]  ;;  %v23_v40 = vld [vmem:[%s738_s1 + $0x10] sm:$0xff] }
  0x16   :  { %v25_v38 = vld [vmem:[%s737_s0] sm:$0xff]  ;;  %v22_v39 = vld [vmem:[%s738_s1 + $0x8] sm:$0xff]  ;;  %v24_v41 = vld [vmem:[%s738_s1 + $0x18] sm:$0xff] }
  0x17   :  { %471 = vmatpush3.xpose.msk.msra.mxu0 %vm81_vm0, %v35_v18  ;;  %v287_v7 = vld [vmem:[%s740_s3] sm:$0x3]  ;;  %s533_s3 = smov [#allocation2]  }
  0x18   :  { %472 = vmatprep.subr.msk.mxu0 %vm81_vm0, %v50_v19  ;;  %s414_s21 = sshll.u32 %s533_s3, 4  ;;  %s415_s21 = int_to_ptr.vmem [resolvable:$true] %s414_s21 }
  0x19   :  { %s509_s22 = scalar_lea.vmem %s415_s21, 64  ;;  %p514_p1 = scmp.lt.s32.totalorder %s415_s21, %s415_s21 }
  0x1a   :  { %p510_p0 = scmp.ne.s32.totalorder %s415_s21, %s509_s22  ;;  %p515_p2 = scmp.lt.s32.totalorder %s509_s22, %s509_s22 }
  0x1b   :  { %473 = vmatpush3.xpose.msk.msra.mxu0 %vm81_vm0, %v34_v20 }
  0x1c   :  { %474 = vmatprep.subr.msk.mxu0 %vm81_vm0, %v49_v21  ;;  %p516_p3 = por %p515_p2, %p514_p1 }
  0x1e   :  { %p517_p4 = pnand %p516_p3, %p510_p0 }
  0x1f   :  { %475 = vmatpush3.xpose.msk.msra.mxu0 %vm81_vm0, %v33_v22 }
  0x20   :  { %476 = vmatprep.subr.msk.mxu0 %vm81_vm0, %v48_v23 }
  0x23   :  { %477 = vmatpush3.xpose.msk.msra.mxu0 %vm81_vm0, %v32_v24 }
  0x24   :  { %478 = vmatprep.subr.msk.mxu0 %vm81_vm0, %v47_v25 }
  0x27   :  { %479 = vmatpush3.xpose.msk.msra.mxu0 %vm81_vm0, %v31_v26 }
  0x28   :  { %480 = vmatprep.subr.msk.mxu0 %vm81_vm0, %v46_v27 }
  0x2b   :  { %481 = vmatpush3.xpose.msk.msra.mxu0 %vm81_vm0, %v30_v28 }
  0x2c   :  { %482 = vmatprep.subr.msk.mxu0 %vm81_vm0, %v45_v29 }
  0x2f   :  { %483 = vmatpush3.xpose.msk.msra.mxu0 %vm81_vm0, %v29_v30 }
  0x30   :  { %484 = vmatprep.subr.msk.mxu0 %vm81_vm0, %v44_v31 }
  0x33   :  { %485 = vmatpush3.xpose.msk.msra.mxu0 %vm81_vm0, %v28_v32 }
  0x34   :  { %486 = vmatprep.subr.msk.mxu0 %vm81_vm0, %v43_v33 }
  0x37   :  { %487 = vmatpush3.xpose.msk.msra.mxu0 %vm81_vm0, %v27_v34 }
  0x38   :  { %488 = vmatprep.subr.msk.mxu0 %vm81_vm0, %v42_v35 }
  0x3b   :  { %489 = vmatpush3.xpose.msk.msra.mxu0 %vm81_vm0, %v26_v36 }
  0x3c   :  { %490 = vmatprep.subr.msk.mxu0 %vm81_vm0, %v41_v37 }
  0x3f   :  { %491 = vmatpush3.xpose.msk.msra.mxu0 %vm81_vm0, %v25_v38 }
  0x42   :  { %493 = vmatmul.mubr.msk.f32.vlgmr.msra.gmra.mxu0 %vm81_vm0, %v594_v8 }
  0x43   :  { %494 = vmatprep.mubr.msk.f32.mxu0 %vm81_vm0, %v22_v39 }
  0x46   :  { %495 = vmatmul.mubr.msk.f32.gmra.mxu0 %vm81_vm0, %v22_v39 }
  0x47   :  { %496 = vmatprep.mubr.msk.f32.mxu0 %vm81_vm0, %v23_v40 }
  0x4a   :  { %497 = vmatmul.mubr.msk.f32.gmra.mxu0 %vm81_vm0, %v23_v40 }
  0x4b   :  { %498 = vmatprep.mubr.msk.f32.mxu0 %vm81_vm0, %v24_v41 }
  0x4e   :  { %499 = vmatmul.mubr.msk.f32.gmra.mxu0 %vm81_vm0, %v24_v41 }
  0x7f   :  { %v69_v50 = vpop.permute.xlu1 %68 }
  0x80   :  { %v79_v47 = vpop.permute.xlu0 %78 }
  0x89   :  { %v74_v52 = vpop.permute.xlu0 %73  ;;  %v64_v58 = vpop.permute.xlu1 %63 }
  0x8d   :  { %v292_v8 = vpop.permute.xlu0 %291 }
 0x102   :  { %v256_v43 = vpop.f32.mrf.mxu0 }
 0x103   :  { %v257_v1 = vadd.f32 %v256_v43, %v64_v58 }
 0x104   :  { %v258_v44 = vpop.f32.mrf.mxu0 }
 0x105   :  { %v259_v63 = vadd.f32 %v258_v44, %v64_v58  ;;  %v279_v6 = vmax.f32 %v257_v1, 0.0 }
 0x106   :  { %v262_v45 = vpop.f32.mrf.mxu0 }
 0x107   :  { %v263_v61 = vadd.f32 %v262_v45, %v69_v50  ;;  %v280_v5 = vmax.f32 %v259_v63, 0.0 }
 0x108   :  { %v264_v46 = vpop.f32.mrf.mxu0 }
 0x109   :  { %v265_v59 = vadd.f32 %v264_v46, %v69_v50  ;;  %v281_v4 = vmax.f32 %v263_v61, 0.0 }
 0x10a   :  { %v268_v48 = vpop.f32.mrf.mxu0 }
 0x10b   :  { %v269_v57 = vadd.f32 %v268_v48, %v74_v52  ;;  %v282_v3 = vmax.f32 %v265_v59, 0.0 }
 0x10c   :  { %v270_v49 = vpop.f32.mrf.mxu0 }
 0x10d   :  { %v271_v55 = vadd.f32 %v270_v49, %v74_v52  ;;  %v283_v2 = vmax.f32 %v269_v57, 0.0 }
 0x10e   :  { %v274_v51 = vpop.f32.mrf.mxu0 }
 0x10f   :  { %v275_v53 = vadd.f32 %v274_v51, %v79_v47  ;;  %v284_v0 = vmax.f32 %v271_v55, 0.0 }
 0x110   :  { %v276_v54 = vpop.f32.mrf.mxu0 }
 0x111   :  { %v277_v56 = vadd.f32 %v276_v54, %v79_v47  ;;  %v285_v62 = vmax.f32 %v275_v53, 0.0 }
 0x113   :  { %v286_v60 = vmax.f32 %v277_v56, 0.0 }
 0x115   :  { %322 = vmatprep.subr.mxu1 %v286_v60 }
 0x116   :  { %323 = vmatpush1.msra.mxu1 %v285_v62 }
 0x117   :  { %324 = vmatprep.subr.mxu1 %v284_v0 }
 0x118   :  { %325 = vmatpush1.msra.mxu1 %v283_v2 }
 0x119   :  { %326 = vmatprep.subr.mxu1 %v282_v3 }
 0x11a   :  { %327 = vmatpush1.msra.mxu1 %v281_v4 }
 0x11b   :  { %328 = vmatprep.subr.mxu1 %v280_v5 }
 0x11c   :  { %329 = vmatpush1.msra.mxu1 %v279_v6 }
 0x11d   :  { %458 = vmatmul.mubr.msk.f32.vlgmr.msra.gmra.mxu1 %vm294_vm1, %v287_v7 }
 0x1dd   :  { %v364_v9 = vpop.f32.mrf.mxu1 }
 0x1de   :  { %v365_v10 = vadd.f32 %v364_v9, %v292_v8 }
 0x1df   :  { %v366_v11 = vpop.f32.mrf.mxu1 }
 0x1e0   :  { %v371_v12 = vrot.slane %v365_v10, 1  ;;  %v367_v13 = vadd.f32 %v366_v11, %v292_v8 }
 0x1e2   :  { %v375_v14 = vsub.f32 %v365_v10, %v371_v12  ;;  %v372_v15 = vrot.slane %v367_v13, 1 }
 0x1e4   :  { %v377_v16 = vmul.f32 0.5, %v375_v14  ;;  %v376_v17 = vsub.f32 %v367_v13, %v372_v15 }
 0x1e6   :  { %505 = vtanh.f32 %v377_v16  ;;  %v378_v18 = vmul.f32 0.5, %v376_v17 }
 0x1e8   :  { %507 = vtanh.f32 %v378_v18 }
 0x1f3   :  { %v506_v19 = vpop.eup %505 }
 0x1f4   :  { %v381_v20 = vadd.f32 1.0, %v506_v19 }
 0x1f5   :  { %v508_v21 = vpop.eup %507 }
 0x1f6   :  { %v383_v22 = vmul.f32 0.5, %v381_v20  ;;  %v382_v23 = vadd.f32 1.0, %v508_v21 }
 0x1f8   :  { %v384_v24 = vmul.f32 0.5, %v382_v23  ;;  %v385_v25 = vsub.f32 1.0, %v383_v22 }
 0x1fa   :  { %v386_v26 = vsub.f32 1.0, %v384_v24  ;;  %v389_v27 = vrot.slane %v385_v25, 7 }
 0x1fc   :  { %v390_v28 = vrot.slane %v386_v26, 7  ;;  %v394_v29 = vsel %vm393_vm2, %v383_v22, %v389_v27 }
 0x1fe   :  { %v395_v30 = vsel %vm393_vm2, %v384_v24, %v390_v28 }
 0x1ff   :  { %v398_v31 = vcombine.low %v394_v29, %v395_v30 }
 0x201   :  { %459 = vst.sshfl [vmem:[#allocation2] sm:$0x33 pattern:$0x76325410] %v398_v31 }
 0x202   :  { %520 = shalt.err (!%p517_p4)
}
 0x203   :  { %417 = dma.vmem_to_hbm [thread:$0]  %s415_s21, 64, %s742_s5, [#allocation3]  }
 0x204   :  { %529 = dma.done.wait [#allocation3], 64  }
 0x205   :  { %530 = vsyncadd [#allocation3], 4294967232 }
 0x206   :  { %421 = vsyncpa [#allocation3], 1 }

</bundles_post_ra>
